<compile_context>
chip_gen: v7x
topology: tpu7x:2x2x1
jax: 0.10.0
libtpu: 0.0.40
codegen_flags: <defaults>
</compile_context>

<pallas_src>
import jax
import jax.numpy as jnp
from jax.experimental import pallas as pl
from jax.experimental.pallas import tpu as pltpu


# ----------------------------------------------------------------------------
# Fused Pallas kernel
# ----------------------------------------------------------------------------

def _fused_forward_kernel(a1_ref, sl_ref, sr_ref, a2_ref, a2r_ref, se_ref, so_ref,
                          x0_ref, w1_ref, b1_ref,
                          w2_ref, b2_ref, w2r_ref, b2r_ref,
                          wp_ref, bp_ref, o_ref):
    f32 = jnp.float32
    bf16 = jnp.bfloat16

    # --- 1-WL GCN layer: relu(A1 @ (X0 @ W1) + b1) -------------------------
    # bf16 MXU operands, f32 accumulation; bias add + ReLU in f32.
    xw = jnp.dot(x0_ref[...], w1_ref[...], preferred_element_type=f32)   # (N, h2) f32
    h1 = jnp.dot(a1_ref[...], xw.astype(bf16), preferred_element_type=f32) + b1_ref[...]
    h1 = jnp.maximum(h1, 0.0)                                            # (N, h2) f32
    h1b = h1.astype(bf16)

    # --- pair gather (one-hot selector matmuls; 0/1 exact in bf16) ---------
    hl = jnp.dot(sl_ref[...], h1b, preferred_element_type=f32)           # (P, h2) f32
    hr = jnp.dot(sr_ref[...], h1b, preferred_element_type=f32)           # (P, h2) f32
    p = (hl * hr).astype(bf16)                                           # multiply in f32

    # --- 2-WL dual GCN: two separate lane-aligned matmul chains ------------
    pw_f = jnp.dot(p, w2_ref[...], preferred_element_type=f32)           # (P, h2) f32
    pw_r = jnp.dot(p, w2r_ref[...], preferred_element_type=f32)          # (P, h2) f32
    fwd = jnp.maximum(
        jnp.dot(a2_ref[...], pw_f.astype(bf16), preferred_element_type=f32) + b2_ref[...],
        0.0)
    rev = jnp.maximum(
        jnp.dot(a2r_ref[...], pw_r.astype(bf16), preferred_element_type=f32) + b2r_ref[...],
        0.0)
    h2b = (fwd + rev).astype(bf16)                                       # (P, h2)

    # --- final gather (even/odd idx), pair multiply, prediction head -------
    ge = jnp.dot(se_ref[...], h2b, preferred_element_type=f32)           # (M/2, h2) f32
    go = jnp.dot(so_ref[...], h2b, preferred_element_type=f32)           # (M/2, h2) f32
    prod = (ge * go).astype(bf16)                                        # multiply in f32

    # Lane-dense (1, M/2) output: contract h2 of wp_row with h2 of prod.
    out_row = jax.lax.dot_general(
        wp_ref[...], prod,
        dimension_numbers=(((1,), (1,)), ((), ())),
        preferred_element_type=f32) + bp_ref[...]
    o_ref[...] = out_row


def fused_local_wl_forward(a1, sl, sr, a2, a2r, se, so,
                           x0, w1, b1, w2, b2, w2r, b2r, wp_row, bp):
    m2 = se.shape[0]
    bf16 = jnp.bfloat16
    # bf16 for everything that feeds the MXU; biases stay f32 (added to f32 acc).
    args = (a1.astype(bf16), sl.astype(bf16), sr.astype(bf16),
            a2.astype(bf16), a2r.astype(bf16), se.astype(bf16), so.astype(bf16),
            x0.astype(bf16), w1.astype(bf16), b1,
            w2.astype(bf16), b2, w2r.astype(bf16), b2r,
            wp_row.astype(bf16), bp)
    # Shapes are tiny -> whole-array VMEM blocks, no grid.
    return pl.pallas_call(
        _fused_forward_kernel,
        out_shape=jax.ShapeDtypeStruct((1, m2), jnp.float32),
        in_specs=[pl.BlockSpec(memory_space=pltpu.MemorySpace.VMEM)] * len(args),
        out_specs=pl.BlockSpec(memory_space=pltpu.MemorySpace.VMEM),
    )(*args)


# ----------------------------------------------------------------------------
# JAX glue
# ----------------------------------------------------------------------------

def gcn_norm_adj(edge_index, num_nodes):
    """Dense GCN-normalized adjacency: D^{-1/2} (A + I) D^{-1/2}.

    edge_index: [2, E] with row 0 = source, row 1 = target (messages src->dst).
    Matches PyG gcn_norm with flow='source_to_target' (degree = in-degree + 1).
    """
    src, dst = edge_index[0], edge_index[1]
    a = jnp.zeros((num_nodes, num_nodes), jnp.float32)
    a = a.at[dst, src].add(1.0)
    a = a + jnp.eye(num_nodes, dtype=jnp.float32)
    deg = jnp.sum(a, axis=1)
    d_inv_sqrt = 1.0 / jnp.sqrt(deg)        # deg >= 1 thanks to the self-loop
    return a * d_inv_sqrt[:, None] * d_inv_sqrt[None, :]


def reverse(ei2):
    # returns (edge2, edge2 with src/dst swapped)
    return ei2, ei2[::-1]


def init_params(key, max_x, hidden_dim_1, hidden_dim_2):
    ks = jax.random.split(key, 8)
    scale = 0.1
    return {
        "emb": scale * jax.random.normal(ks[0], (max_x + 1, hidden_dim_1), jnp.float32),
        "w1": scale * jax.random.normal(ks[1], (hidden_dim_1, hidden_dim_2), jnp.float32),
        "b1": scale * jax.random.normal(ks[2], (1, hidden_dim_2), jnp.float32),
        "w2": scale * jax.random.normal(ks[3], (hidden_dim_2, hidden_dim_2), jnp.float32),
        "b2": scale * jax.random.normal(ks[4], (1, hidden_dim_2), jnp.float32),
        "w2r": scale * jax.random.normal(ks[5], (hidden_dim_2, hidden_dim_2), jnp.float32),
        "b2r": scale * jax.random.normal(ks[6], (1, hidden_dim_2), jnp.float32),
        "wp": scale * jax.random.normal(ks[7], (hidden_dim_2, 1), jnp.float32),
        "bp": jnp.zeros((1, 1), jnp.float32),
    }


@jax.jit
def local_wl_net_forward(params, x_ids, edge1, pos, idx, ei2):
    num_nodes = x_ids.shape[0]
    num_pairs = pos.shape[0]

    edge2, edge2_r = reverse(ei2)

    # emb(x).squeeze(): embedding lookup (LayerNorm/GraphNorm identity,
    # Dropout identity in eval mode).
    x0 = params["emb"][x_ids]                                        # (N, h1)

    # Dense GCN-normalized adjacencies (XLA prelude).
    a1 = gcn_norm_adj(edge1, num_nodes)
    a2 = gcn_norm_adj(edge2, num_pairs)
    a2r = gcn_norm_adj(edge2_r, num_pairs)

    # One-hot row selectors: all gathers become exact MXU matmuls in-kernel.
    sl = jax.nn.one_hot(pos[:, 0], num_nodes, dtype=jnp.float32)     # (P, N)
    sr = jax.nn.one_hot(pos[:, 1], num_nodes, dtype=jnp.float32)     # (P, N)
    se = jax.nn.one_hot(idx[0::2], num_pairs, dtype=jnp.float32)     # (M/2, P)
    so = jax.nn.one_hot(idx[1::2], num_pairs, dtype=jnp.float32)     # (M/2, P)

    wp_row = params["wp"].reshape(1, -1)                             # (1, h2)

    out_row = fused_local_wl_forward(
        a1, sl, sr, a2, a2r, se, so,
        x0, params["w1"], params["b1"],
        params["w2"], params["b2"], params["w2r"], params["b2r"],
        wp_row, params["bp"])
    return out_row.T                                                 # (M/2, 1)


def _reference_forward(params, x_ids, edge1, pos, idx, ei2):
    """Pure-JAX f32 reference mirroring the PyTorch module (for correctness check)."""
    edge2, edge2_r = reverse(ei2)
    n, p_ = x_ids.shape[0], pos.shape[0]
    h = params["emb"][x_ids]
    a1 = gcn_norm_adj(edge1, n)
    h = jnp.maximum(a1 @ (h @ params["w1"]) + params["b1"], 0.0)
    h = h[pos[:, 0]] * h[pos[:, 1]]
    a2 = gcn_norm_adj(edge2, p_)
    a2r = gcn_norm_adj(edge2_r, p_)
    fwd = jnp.maximum(a2 @ (h @ params["w2"]) + params["b2"], 0.0)
    rev = jnp.maximum(a2r @ (h @ params["w2r"]) + params["b2r"], 0.0)
    h = fwd + rev
    h = h[idx]
    h = h[0::2] * h[1::2]
    return h @ params["wp"] + params["bp"]


# ----------------------------------------------------------------------------
# Main
# ----------------------------------------------------------------------------

if __name__ == "__main__":
    key = jax.random.PRNGKey(0)
    k_param, k_x, k_e1, k_pos, k_e2, k_idx = jax.random.split(key, 6)

    MAX_X = 20
    HIDDEN_1 = 64
    HIDDEN_2 = 32
    N_NODES = 16       # nodes of the 1-WL graph
    N_EDGES1 = 40
    N_PAIRS = 16       # nodes of the 2-WL graph (one per pos pair)
    N_EDGES2 = 32
    N_IDX = 8          # must be even

    params = init_params(k_param, MAX_X, HIDDEN_1, HIDDEN_2)

    x_ids = jax.random.randint(k_x, (N_NODES,), 0, MAX_X + 1, dtype=jnp.int32)
    edge1 = jax.random.randint(k_e1, (2, N_EDGES1), 0, N_NODES, dtype=jnp.int32)
    pos = jax.random.randint(k_pos, (N_PAIRS, 2), 0, N_NODES, dtype=jnp.int32)
    ei2 = jax.random.randint(k_e2, (2, N_EDGES2), 0, N_PAIRS, dtype=jnp.int32)
    idx = jax.random.randint(k_idx, (N_IDX,), 0, N_PAIRS, dtype=jnp.int32)

    out = local_wl_net_forward(params, x_ids, edge1, pos, idx, ei2)
    out = jax.block_until_ready(out)
    assert out.shape == (N_IDX // 2, 1), out.shape
    assert bool(jnp.all(jnp.isfinite(out)))

    # f32 reference; tolerance accounts for the bf16 MXU-operand casts
    # (selectors/one-hots are exact in bf16, adjacency/weights round to ~1e-2 rel).
    ref = _reference_forward(params, x_ids, edge1, pos, idx, ei2)
    ref = jax.block_until_ready(ref)
    assert bool(jnp.allclose(out, ref, rtol=5e-2, atol=5e-3)), (out, ref)

    print("KERNEL_OK")
</pallas_src>

<mosaic_0001>
module attributes {stable_mosaic.version = 11 : i64} {
  func.func private @main(%arg0: i32) attributes {dimension_semantics = [#tpu.dimension_semantics<core_parallel>], iteration_bounds = array<i64: 2>, tpu.core_type = #tpu.core_type<sc_scalar_subcore>, window_params = []} {
    return
  }
}

module attributes {stable_mosaic.version = 11 : i64} {
  func.func private @main(%arg0: i32) attributes {dimension_semantics = [#tpu.dimension_semantics<core_parallel>], iteration_bounds = array<i64: 2>, tpu.core_type = #tpu.core_type<sc_scalar_subcore>, window_params = []} {
    return
  }
}

module attributes {stable_mosaic.version = 11 : i64} {
  func.func @_fused_forward_kernel(%arg0: memref<16x16xbf16, #tpu.memory_space<vmem>>, %arg1: memref<16x16xbf16, #tpu.memory_space<vmem>>, %arg2: memref<16x16xbf16, #tpu.memory_space<vmem>>, %arg3: memref<16x16xbf16, #tpu.memory_space<vmem>>, %arg4: memref<16x16xbf16, #tpu.memory_space<vmem>>, %arg5: memref<4x16xbf16, #tpu.memory_space<vmem>>, %arg6: memref<4x16xbf16, #tpu.memory_space<vmem>>, %arg7: memref<16x64xbf16, #tpu.memory_space<vmem>>, %arg8: memref<64x32xbf16, #tpu.memory_space<vmem>>, %arg9: memref<1x32xf32, #tpu.memory_space<vmem>>, %arg10: memref<32x32xbf16, #tpu.memory_space<vmem>>, %arg11: memref<1x32xf32, #tpu.memory_space<vmem>>, %arg12: memref<32x32xbf16, #tpu.memory_space<vmem>>, %arg13: memref<1x32xf32, #tpu.memory_space<vmem>>, %arg14: memref<1x32xbf16, #tpu.memory_space<vmem>>, %arg15: memref<1x1xf32, #tpu.memory_space<vmem>>, %arg16: memref<1x4xf32, #tpu.memory_space<vmem>>) attributes {dimension_semantics = [], scalar_prefetch = 0 : i64, scratch_operands = 0 : i64, tpu.core_type = #tpu.core_type<tc>} {
    %c0 = arith.constant 0 : index
    %c0_0 = arith.constant 0 : index
    %0 = vector.load %arg7[%c0, %c0_0] : memref<16x64xbf16, #tpu.memory_space<vmem>>, vector<16x64xbf16>
    %c0_1 = arith.constant 0 : index
    %c0_2 = arith.constant 0 : index
    %1 = vector.load %arg8[%c0_1, %c0_2] : memref<64x32xbf16, #tpu.memory_space<vmem>>, vector<64x32xbf16>
    %cst = arith.constant dense<0.000000e+00> : vector<16x32xf32>
    %2 = tpu.matmul %0, %1, %cst {dimension_numbers = #tpu.dot_dimension_numbers<[1], [0], [0], [1], [0, 0, 1, 1], [], []>} : vector<16x64xbf16>, vector<64x32xbf16>, vector<16x32xf32> -> vector<16x32xf32>
    %c0_3 = arith.constant 0 : index
    %c0_4 = arith.constant 0 : index
    %3 = vector.load %arg0[%c0_3, %c0_4] : memref<16x16xbf16, #tpu.memory_space<vmem>>, vector<16x16xbf16>
    %4 = arith.truncf %2 : vector<16x32xf32> to vector<16x32xbf16>
    %cst_5 = arith.constant dense<0.000000e+00> : vector<16x32xf32>
    %5 = tpu.matmul %3, %4, %cst_5 {dimension_numbers = #tpu.dot_dimension_numbers<[1], [0], [0], [1], [0, 0, 1, 1], [], []>} : vector<16x16xbf16>, vector<16x32xbf16>, vector<16x32xf32> -> vector<16x32xf32>
    %c0_6 = arith.constant 0 : index
    %c0_7 = arith.constant 0 : index
    %6 = vector.load %arg9[%c0_6, %c0_7] : memref<1x32xf32, #tpu.memory_space<vmem>>, vector<1x32xf32>
    %7 = vector.broadcast %6 : vector<1x32xf32> to vector<16x32xf32>
    %8 = arith.addf %5, %7 : vector<16x32xf32>
    %cst_8 = arith.constant 0.000000e+00 : f32
    %9 = vector.broadcast %cst_8 : f32 to vector<16x32xf32>
    %10 = arith.maximumf %8, %9 : vector<16x32xf32>
    %11 = arith.truncf %10 : vector<16x32xf32> to vector<16x32xbf16>
    %c0_9 = arith.constant 0 : index
    %c0_10 = arith.constant 0 : index
    %12 = vector.load %arg1[%c0_9, %c0_10] : memref<16x16xbf16, #tpu.memory_space<vmem>>, vector<16x16xbf16>
    %cst_11 = arith.constant dense<0.000000e+00> : vector<16x32xf32>
    %13 = tpu.matmul %12, %11, %cst_11 {dimension_numbers = #tpu.dot_dimension_numbers<[1], [0], [0], [1], [0, 0, 1, 1], [], []>} : vector<16x16xbf16>, vector<16x32xbf16>, vector<16x32xf32> -> vector<16x32xf32>
    %c0_12 = arith.constant 0 : index
    %c0_13 = arith.constant 0 : index
    %14 = vector.load %arg2[%c0_12, %c0_13] : memref<16x16xbf16, #tpu.memory_space<vmem>>, vector<16x16xbf16>
    %cst_14 = arith.constant dense<0.000000e+00> : vector<16x32xf32>
    %15 = tpu.matmul %14, %11, %cst_14 {dimension_numbers = #tpu.dot_dimension_numbers<[1], [0], [0], [1], [0, 0, 1, 1], [], []>} : vector<16x16xbf16>, vector<16x32xbf16>, vector<16x32xf32> -> vector<16x32xf32>
    %16 = arith.mulf %13, %15 : vector<16x32xf32>
    %17 = arith.truncf %16 : vector<16x32xf32> to vector<16x32xbf16>
    %c0_15 = arith.constant 0 : index
    %c0_16 = arith.constant 0 : index
    %18 = vector.load %arg10[%c0_15, %c0_16] : memref<32x32xbf16, #tpu.memory_space<vmem>>, vector<32x32xbf16>
    %cst_17 = arith.constant dense<0.000000e+00> : vector<16x32xf32>
    %19 = tpu.matmul %17, %18, %cst_17 {dimension_numbers = #tpu.dot_dimension_numbers<[1], [0], [0], [1], [0, 0, 1, 1], [], []>} : vector<16x32xbf16>, vector<32x32xbf16>, vector<16x32xf32> -> vector<16x32xf32>
    %c0_18 = arith.constant 0 : index
    %c0_19 = arith.constant 0 : index
    %20 = vector.load %arg12[%c0_18, %c0_19] : memref<32x32xbf16, #tpu.memory_space<vmem>>, vector<32x32xbf16>
    %cst_20 = arith.constant dense<0.000000e+00> : vector<16x32xf32>
    %21 = tpu.matmul %17, %20, %cst_20 {dimension_numbers = #tpu.dot_dimension_numbers<[1], [0], [0], [1], [0, 0, 1, 1], [], []>} : vector<16x32xbf16>, vector<32x32xbf16>, vector<16x32xf32> -> vector<16x32xf32>
    %c0_21 = arith.constant 0 : index
    %c0_22 = arith.constant 0 : index
    %22 = vector.load %arg3[%c0_21, %c0_22] : memref<16x16xbf16, #tpu.memory_space<vmem>>, vector<16x16xbf16>
    %23 = arith.truncf %19 : vector<16x32xf32> to vector<16x32xbf16>
    %cst_23 = arith.constant dense<0.000000e+00> : vector<16x32xf32>
    %24 = tpu.matmul %22, %23, %cst_23 {dimension_numbers = #tpu.dot_dimension_numbers<[1], [0], [0], [1], [0, 0, 1, 1], [], []>} : vector<16x16xbf16>, vector<16x32xbf16>, vector<16x32xf32> -> vector<16x32xf32>
    %c0_24 = arith.constant 0 : index
    %c0_25 = arith.constant 0 : index
    %25 = vector.load %arg11[%c0_24, %c0_25] : memref<1x32xf32, #tpu.memory_space<vmem>>, vector<1x32xf32>
    %26 = vector.broadcast %25 : vector<1x32xf32> to vector<16x32xf32>
    %27 = arith.addf %24, %26 : vector<16x32xf32>
    %cst_26 = arith.constant 0.000000e+00 : f32
    %28 = vector.broadcast %cst_26 : f32 to vector<16x32xf32>
    %29 = arith.maximumf %27, %28 : vector<16x32xf32>
    %c0_27 = arith.constant 0 : index
    %c0_28 = arith.constant 0 : index
    %30 = vector.load %arg4[%c0_27, %c0_28] : memref<16x16xbf16, #tpu.memory_space<vmem>>, vector<16x16xbf16>
    %31 = arith.truncf %21 : vector<16x32xf32> to vector<16x32xbf16>
    %cst_29 = arith.constant dense<0.000000e+00> : vector<16x32xf32>
    %32 = tpu.matmul %30, %31, %cst_29 {dimension_numbers = #tpu.dot_dimension_numbers<[1], [0], [0], [1], [0, 0, 1, 1], [], []>} : vector<16x16xbf16>, vector<16x32xbf16>, vector<16x32xf32> -> vector<16x32xf32>
    %c0_30 = arith.constant 0 : index
    %c0_31 = arith.constant 0 : index
    %33 = vector.load %arg13[%c0_30, %c0_31] : memref<1x32xf32, #tpu.memory_space<vmem>>, vector<1x32xf32>
    %34 = vector.broadcast %33 : vector<1x32xf32> to vector<16x32xf32>
    %35 = arith.addf %32, %34 : vector<16x32xf32>
    %cst_32 = arith.constant 0.000000e+00 : f32
    %36 = vector.broadcast %cst_32 : f32 to vector<16x32xf32>
    %37 = arith.maximumf %35, %36 : vector<16x32xf32>
    %38 = arith.addf %29, %37 : vector<16x32xf32>
    %39 = arith.truncf %38 : vector<16x32xf32> to vector<16x32xbf16>
    %c0_33 = arith.constant 0 : index
    %c0_34 = arith.constant 0 : index
    %40 = vector.load %arg5[%c0_33, %c0_34] : memref<4x16xbf16, #tpu.memory_space<vmem>>, vector<4x16xbf16>
    %cst_35 = arith.constant dense<0.000000e+00> : vector<4x32xf32>
    %41 = tpu.matmul %40, %39, %cst_35 {dimension_numbers = #tpu.dot_dimension_numbers<[1], [0], [0], [1], [0, 0, 1, 1], [], []>} : vector<4x16xbf16>, vector<16x32xbf16>, vector<4x32xf32> -> vector<4x32xf32>
    %c0_36 = arith.constant 0 : index
    %c0_37 = arith.constant 0 : index
    %42 = vector.load %arg6[%c0_36, %c0_37] : memref<4x16xbf16, #tpu.memory_space<vmem>>, vector<4x16xbf16>
    %cst_38 = arith.constant dense<0.000000e+00> : vector<4x32xf32>
    %43 = tpu.matmul %42, %39, %cst_38 {dimension_numbers = #tpu.dot_dimension_numbers<[1], [0], [0], [1], [0, 0, 1, 1], [], []>} : vector<4x16xbf16>, vector<16x32xbf16>, vector<4x32xf32> -> vector<4x32xf32>
    %44 = arith.mulf %41, %43 : vector<4x32xf32>
    %45 = arith.truncf %44 : vector<4x32xf32> to vector<4x32xbf16>
    %c0_39 = arith.constant 0 : index
    %c0_40 = arith.constant 0 : index
    %46 = vector.load %arg14[%c0_39, %c0_40] : memref<1x32xbf16, #tpu.memory_space<vmem>>, vector<1x32xbf16>
    %cst_41 = arith.constant dense<0.000000e+00> : vector<1x4xf32>
    %47 = tpu.matmul %46, %45, %cst_41 {dimension_numbers = #tpu.dot_dimension_numbers<[1], [1], [0], [0], [0, 0, 1, 0], [], []>} : vector<1x32xbf16>, vector<4x32xbf16>, vector<1x4xf32> -> vector<1x4xf32>
    %c0_42 = arith.constant 0 : index
    %c0_43 = arith.constant 0 : index
    %48 = vector.load %arg15[%c0_42, %c0_43] : memref<1x1xf32, #tpu.memory_space<vmem>>, vector<1x1xf32>
    %49 = vector.broadcast %48 : vector<1x1xf32> to vector<1x4xf32>
    %50 = arith.addf %47, %49 : vector<1x4xf32>
    %c0_44 = arith.constant 0 : index
    %c0_45 = arith.constant 0 : index
    %51 = vector.load %arg16[%c0_44, %c0_45] : memref<1x4xf32, #tpu.memory_space<vmem>>, vector<1x4xf32>
    tpu.vector_store %arg16[%c0_44, %c0_45], %50 {strides = array<i32>} : memref<1x4xf32, #tpu.memory_space<vmem>>, vector<1x4xf32>,
    return
  }
}

</mosaic_0001>

<bundles_post_ra>
// kernel: local_wl_net_forward.1
= control target key start
LH: loop header
LB: loop body
LE: loop exit
PB: predicated region body
PF: predicated region fallthrough
CT: control target
= control target key end

     0   :  { %s1102_s0 = inlined_call_operand.vmem [shape: bf16[16,16], index: 0, kind: input, shape index: {}]   ;;  %s1103_s1 = inlined_call_operand.vmem [shape: bf16[16,16], index: 1, kind: input, shape index: {}]   ;;  %s1104_s2 = inlined_call_operand.vmem [shape: bf16[16,16], index: 2, kind: input, shape index: {}]   ;;  %s1105_s3 = inlined_call_operand.vmem [shape: bf16[16,16], index: 3, kind: input, shape index: {}]   ;;  %s1106_s4 = inlined_call_operand.vmem [shape: bf16[16,16], index: 4, kind: input, shape index: {}]   ;;  %s1107_s5 = inlined_call_operand.vmem [shape: bf16[4,16], index: 5, kind: input, shape index: {}]   ;;  %s1108_s6 = inlined_call_operand.vmem [shape: bf16[4,16], index: 6, kind: input, shape index: {}]   ;;  %s1109_s7 = inlined_call_operand.vmem [shape: bf16[16,64], index: 7, kind: input, shape index: {}]   ;;  %s1110_s8 = inlined_call_operand.vmem [shape: bf16[64,32], index: 8, kind: input, shape index: {}]   ;;  %s1111_s9 = inlined_call_operand.vmem [shape: f32[1,32], index: 9, kind: input, shape index: {}]   ;;  %s1112_s10 = inlined_call_operand.vmem [shape: bf16[32,32], index: 10, kind: input, shape index: {}]   ;;  %s1113_s11 = inlined_call_operand.vmem [shape: f32[1,32], index: 11, kind: input, shape index: {}]   ;;  %s1114_s12 = inlined_call_operand.vmem [shape: bf16[32,32], index: 12, kind: input, shape index: {}]   ;;  %s1115_s13 = inlined_call_operand.vmem [shape: f32[1,32], index: 13, kind: input, shape index: {}]   ;;  %s1116_s14 = inlined_call_operand.vmem [shape: bf16[1,32], index: 14, kind: input, shape index: {}]   ;;  %s1117_s15 = inlined_call_operand.<no memory space> [shape: f32[1,1], index: 15, kind: input, shape index: {}]   ;;  %s1118_s16 = inlined_call_operand.hbm [shape: f32[1,4], index: 16, kind: output, shape index: {}]  }
   0x1   :  { %1119 = sst [smem:[#allocation6_spill]] %s1102_s0  ;;  %v21_v0 = vstv %s1117_s15 }
   0x2   :  { %22 = vst [vmem:[#allocation2] sm:$0x1] %v21_v0 }
   0x3   :  { %v851_v1 = vld [vmem:[%s1110_s8] sm:$0xff]   ;;  %v889_v2 = vmov 0.0   ;;  %v852_v3 = vld [vmem:[%s1110_s8 + $0x8] sm:$0xff]   ;;  %vm890_vm0 = vmmov 0   ;;  %v853_v4 = vld [vmem:[%s1110_s8 + $0x10] sm:$0xff]  }
   0x4   :  { %770 = vmatprep.subr.bf16.mxu0 %v889_v2  ;;  %782 = vmatprep.subr.bf16.mxu1 %v889_v2  ;;  %v854_v5 = vld [vmem:[%s1110_s8 + $0x18] sm:$0xff]  }
   0x5   :  { %771 = vmatpush3.bf16.msra.mxu0 %v851_v1  ;;  %778 = vmatprep.mubr.msk.bf16.mxu0 %vm890_vm0, %v889_v2 }
   0x6   :  { %772 = vmatprep.subr.bf16.mxu0 %v889_v2  ;;  %784 = vmatprep.mubr.msk.bf16.mxu1 %vm890_vm0, %v889_v2 }
   0x9   :  { %773 = vmatpush3.bf16.msra.mxu0 %v852_v3 }
   0xa   :  { %774 = vmatprep.subr.bf16.mxu0 %v889_v2 }
   0xd   :  { %775 = vmatpush3.bf16.msra.mxu0 %v853_v4 }
   0xe   :  { %776 = vmatprep.subr.bf16.mxu0 %v889_v2 }
   0xf   :  { %23 = vsyncpa [#allocation4], 0  ;;  %v855_v6 = vld [vmem:[%s1109_s7] sm:$0xff]   ;;  %vm96_vm1 = vcmask 523264   ;;  %s1120_s18 = sld [smem:[#allocation6_spill]]  ;;  %vm156_vm2 = vcmask 130048  }
  0x10   :  { %v721_v13 = vld [vmem:[%s1111_s9] ss:$0 sm:$0xff]  ;;  %v861_v27 = vld [vmem:[%s1112_s10 + $0x8] sm:$0xff]   ;;  %vm325_vm3 = vcmask 261120   ;;  %vm699_vm4 = vcmask 24576  }
  0x11   :  { %777 = vmatpush3.bf16.msra.mxu0 %v854_v5  ;;  %v857_v23 = vld [vmem:[%s1103_s1] sm:$0xff]   ;;  %v862_v28 = vld [vmem:[%s1114_s12 + $0x8] sm:$0xff]  }
  0x12   :  { %800 = vmatprep.subr.bf16.mxu0 %v889_v2  ;;  %v858_v24 = vld [vmem:[%s1104_s2] sm:$0xff]  }
  0x13   :  { %v859_v25 = vld [vmem:[%s1112_s10] sm:$0xff]  }
  0x14   :  { %779 = vmatmul.mubr.msk.bf16.vlgmr.msra.gmra.mrb[0].mxu0 %vm96_vm1, %v855_v6  ;;  %v860_v26 = vld [vmem:[%s1114_s12] sm:$0xff]  }
  0x15   :  { %804 = vmatprep.mubr.msk.bf16.mxu0 %vm890_vm0, %v889_v2  ;;  %v856_v12 = vld [vmem:[%s1120_s18] sm:$0xff]   ;;  %801 = vmatpush3.bf16.msra.mxu0 %v859_v25  ;;  %v649_v25 = vlaneseq  ;;  %s892_s18 = smov [#allocation3]  }
  0x16   :  { %802 = vmatprep.subr.bf16.mxu0 %v889_v2  ;;  %v863_v50 = vld [vmem:[%s1105_s3] sm:$0xff]   ;;  %s707_s7 = sshll.u32 %s892_s18, 4  ;;  %s708_s7 = int_to_ptr.vmem [resolvable:$true] %s707_s7 }
  0x17   :  { %v864_v51 = vld [vmem:[%s1106_s4] sm:$0xff]   ;;  %s865_s19 = scalar_lea.vmem %s708_s7, 16  ;;  %p870_p1 = scmp.lt.s32.totalorder %s708_s7, %s708_s7 }
  0x18   :  { %v734_v52 = vld [vmem:[%s1113_s11] ss:$0 sm:$0xff]  ;;  %p866_p0 = scmp.ne.s32.totalorder %s708_s7, %s865_s19 }
  0x19   :  { %803 = vmatpush3.bf16.msra.mxu0 %v861_v27  ;;  %v737_v53 = vld [vmem:[%s1115_s13] ss:$0 sm:$0xff] }
  0x1a   :  { %816 = vmatprep.subr.bf16.mxu0 %v889_v2 }
  0xe7   :  { %v134_v7 = vpop.f32.mrb[0].mxu0 }
  0xe8   :  { %v780_v8 = vpop.f32.mrb[1].mxu0 }
  0xe9   :  { %v137_v9 = vpop.f32.mrb[2].mxu0 }
  0xea   :  { %v143_v10 = vpack.c.bf16 %v137_v9, %v134_v7  ;;  %v781_v11 = vpop.f32.mrb[3].mxu0 }
  0xeb   :  { %v596_v11 = vld [vmem:[%s1108_s6] sm:$0x3] }
  0xec   :  { %783 = vmatpush3.bf16.msra.mxu1 %v143_v10  ;;  %v552_v10 = vld [vmem:[%s1107_s5] sm:$0x3] }
  0xed   :  { %788 = vmatprep.subr.bf16.mxu1 %v889_v2 }
  0xef   :  { %785 = vmatmul.mubr.msk.bf16.vlgmr.msra.gmra.mrb[0].mxu1 %vm156_vm2, %v856_v12  ;;  %v643_v12 = vld [vmem:[#allocation2] sm:$0x1] }
  0xf0   :  { %790 = vmatprep.mubr.msk.bf16.mxu1 %vm890_vm0, %v889_v2 }
 0x1c2   :  { %v194_v14 = vpop.f32.mrb[0].mxu1 }
 0x1c3   :  { %v195_v15 = vadd.f32 %v721_v13, %v194_v14  ;;  %v786_v16 = vpop.f32.mrb[1].mxu1 }
 0x1c4   :  { %v197_v17 = vpop.f32.mrb[2].mxu1 }
 0x1c5   :  { %v198_v18 = vadd.f32 %v721_v13, %v197_v17  ;;  %v787_v19 = vpop.f32.mrb[3].mxu1  ;;  %v201_v20 = vmax.f32 %v195_v15, 0.0  ;;  %v891_v13 = vmov 0  }
 0x1c6   :  { %850 = vset.pattern.permute.xlu0 %v891_v13 }
 0x1c7   :  { %v202_v21 = vmax.f32 %v198_v18, 0.0  ;;  %646 = vperm.xlu0 %850, %v643_v12  }
 0x1c9   :  { %v203_v22 = vpack.c.bf16 %v202_v21, %v201_v20 }
 0x1cb   :  { %789 = vmatpush3.bf16.msra.mxu1 %v203_v22 }
 0x1cc   :  { %794 = vmatprep.subr.bf16.mxu1 %v889_v2 }
 0x1ce   :  { %791 = vmatmul.mubr.msk.bf16.vlgmr.msra.gmra.mrb[4].mxu1 %vm156_vm2, %v857_v23 }
 0x1cf   :  { %795 = vmatpush3.bf16.msra.mxu1 %v203_v22  ;;  %796 = vmatprep.mubr.msk.bf16.mxu1 %vm890_vm0, %v889_v2 }
 0x1d0   :  { %808 = vmatprep.subr.bf16.mxu1 %v889_v2 }
 0x1d6   :  { %797 = vmatmul.mubr.msk.bf16.vlgmr.msra.gmra.mrb[8].mxu1 %vm156_vm2, %v858_v24 }
 0x1d7   :  { %812 = vmatprep.mubr.msk.bf16.mxu1 %vm890_vm0, %v889_v2  ;;  %809 = vmatpush3.bf16.msra.mxu1 %v860_v26  ;;  %v650_v26 = vshrl.u32 %v649_v25, 7 }
 0x1d8   :  { %810 = vmatprep.subr.bf16.mxu1 %v889_v2 }
 0x1d9   :  { %v651_v27 = vsub.s32 0, %v650_v26 }
 0x1db   :  { %811 = vmatpush3.bf16.msra.mxu1 %v862_v28 }
 0x1dc   :  { %822 = vmatprep.subr.bf16.mxu1 %v889_v2 }
 0x246   :  { %v647_v28 = vpop.permute.xlu0 %646 }
 0x2a1   :  { %v248_v29 = vpop.f32.mrb[4].mxu1 }
 0x2a2   :  { %v792_v30 = vpop.f32.mrb[5].mxu1 }
 0x2a3   :  { %v251_v31 = vpop.f32.mrb[6].mxu1 }
 0x2a4   :  { %v793_v32 = vpop.f32.mrb[7].mxu1 }
 0x2a9   :  { %v299_v33 = vpop.f32.mrb[8].mxu1 }
 0x2aa   :  { %v306_v34 = vmul.f32 %v299_v33, %v248_v29  ;;  %v798_v35 = vpop.f32.mrb[9].mxu1  ;;  %v652_v29 = vrot.slane %v647_v28, %v651_v27 }
 0x2ab   :  { %v302_v36 = vpop.f32.mrb[10].mxu1 }
 0x2ac   :  { %v307_v37 = vmul.f32 %v302_v36, %v251_v31  ;;  %v799_v38 = vpop.f32.mrb[11].mxu1 }
 0x2ae   :  { %v308_v39 = vpack.c.bf16 %v307_v37, %v306_v34 }
 0x2b0   :  { %805 = vmatmul.mubr.msk.bf16.vlgmr.msra.gmra.mrb[4].mxu0 %vm325_vm3, %v308_v39  ;;  %813 = vmatmul.mubr.msk.bf16.vlgmr.msra.gmra.mrb[12].mxu1 %vm325_vm3, %v308_v39 }
 0x2b1   :  { %818 = vmatprep.mubr.msk.bf16.mxu0 %vm890_vm0, %v889_v2  ;;  %824 = vmatprep.mubr.msk.bf16.mxu1 %vm890_vm0, %v889_v2 }
 0x383   :  { %v363_v40 = vpop.f32.mrb[4].mxu0  ;;  %v420_v41 = vpop.f32.mrb[12].mxu1 }
 0x384   :  { %v806_v42 = vpop.f32.mrb[5].mxu0  ;;  %v814_v43 = vpop.f32.mrb[13].mxu1 }
 0x385   :  { %v366_v44 = vpop.f32.mrb[6].mxu0  ;;  %v423_v45 = vpop.f32.mrb[14].mxu1 }
 0x386   :  { %v429_v46 = vpack.c.bf16 %v366_v44, %v363_v40  ;;  %v490_v47 = vpack.c.bf16 %v423_v45, %v420_v41  ;;  %v807_v48 = vpop.f32.mrb[7].mxu0  ;;  %v815_v49 = vpop.f32.mrb[15].mxu1 }
 0x388   :  { %817 = vmatpush3.bf16.msra.mxu0 %v429_v46  ;;  %823 = vmatpush3.bf16.msra.mxu1 %v490_v47 }
 0x389   :  { %828 = vmatprep.subr.bf16.mxu0 %v889_v2  ;;  %834 = vmatprep.subr.bf16.mxu1 %v889_v2 }
 0x38b   :  { %819 = vmatmul.mubr.msk.bf16.vlgmr.msra.gmra.mrb[8].mxu0 %vm156_vm2, %v863_v50  ;;  %825 = vmatmul.mubr.msk.bf16.vlgmr.msra.gmra.mrb[16].mxu1 %vm156_vm2, %v864_v51 }
 0x38c   :  { %830 = vmatprep.mubr.msk.bf16.mxu0 %vm890_vm0, %v889_v2  ;;  %836 = vmatprep.mubr.msk.bf16.mxu1 %vm890_vm0, %v889_v2 }
 0x45e   :  { %v479_v54 = vpop.f32.mrb[8].mxu0  ;;  %v540_v55 = vpop.f32.mrb[16].mxu1 }
 0x45f   :  { %v480_v56 = vadd.f32 %v734_v52, %v479_v54  ;;  %v541_v57 = vadd.f32 %v737_v53, %v540_v55  ;;  %v820_v58 = vpop.f32.mrb[9].mxu0  ;;  %v826_v59 = vpop.f32.mrb[17].mxu1 }
 0x460   :  { %v482_v60 = vpop.f32.mrb[10].mxu0  ;;  %v543_v61 = vpop.f32.mrb[18].mxu1 }
 0x461   :  { %v486_v62 = vmax.f32 %v480_v56, 0.0  ;;  %v547_v63 = vmax.f32 %v541_v57, 0.0  ;;  %v483_v0 = vadd.f32 %v734_v52, %v482_v60  ;;  %v544_v1 = vadd.f32 %v737_v53, %v543_v61  ;;  %v821_v3 = vpop.f32.mrb[11].mxu0  ;;  %v827_v4 = vpop.f32.mrb[19].mxu1 }
 0x463   :  { %v549_v5 = vadd.f32 %v547_v63, %v486_v62  ;;  %v487_v6 = vmax.f32 %v483_v0, 0.0  ;;  %v548_v7 = vmax.f32 %v544_v1, 0.0 }
 0x465   :  { %v550_v8 = vadd.f32 %v548_v7, %v487_v6 }
 0x467   :  { %v551_v9 = vpack.c.bf16 %v550_v8, %v549_v5 }
 0x469   :  { %829 = vmatpush3.bf16.msra.mxu0 %v551_v9  ;;  %835 = vmatpush3.bf16.msra.mxu1 %v551_v9 }
 0x46a   :  { %840 = vmatprep.subr.bf16.mxu0 %v889_v2 }
 0x46c   :  { %831 = vmatmul.mubr.msk.bf16.vlgmr.msra.gmra.mrb[12].mxu0 %vm156_vm2, %v552_v10  ;;  %837 = vmatmul.mubr.msk.bf16.vlgmr.msra.gmra.mrb[20].mxu1 %vm156_vm2, %v596_v11 }
 0x46d   :  { %842 = vmatprep.mubr.msk.bf16.mxu0 %vm890_vm0, %v889_v2  ;;  %v642_v2 = vld [vmem:[%s1116_s14] sm:$0x1]  ;;  %s869_s14 = scalar_lea.vmem %s708_s7, 32 }
 0x46e   :  { %p871_p2 = scmp.lt.s32.totalorder %s869_s14, %s865_s19 }
 0x470   :  { %p872_p3 = por %p871_p2, %p870_p1 }
 0x472   :  { %p873_p4 = pnand %p872_p3, %p866_p0 }
 0x53f   :  { %v590_v14 = vpop.f32.mrb[12].mxu0  ;;  %v634_v15 = vpop.f32.mrb[20].mxu1 }
 0x540   :  { %v640_v16 = vmul.f32 %v634_v15, %v590_v14  ;;  %v832_v17 = vpop.f32.mrb[13].mxu0  ;;  %v838_v18 = vpop.f32.mrb[21].mxu1 }
 0x541   :  { %v593_v19 = vpop.f32.mrb[14].mxu0  ;;  %v637_v20 = vpop.f32.mrb[22].mxu1 }
 0x542   :  { %v641_v21 = vpack.c.bf16 %v640_v16, %v640_v16  ;;  %v833_v22 = vpop.f32.mrb[15].mxu0  ;;  %v839_v23 = vpop.f32.mrb[23].mxu1 }
 0x544   :  { %v657_v24 = vsel %vm325_vm3, %v641_v21, 0 }
 0x545   :  { %841 = vmatpush3.bf16.xpose.msra.mxu0 %v657_v24 }
 0x54c   :  { %843 = vmatmul.mubr.msk.bf16.vlgmr.msra.gmra.mrb[16].mxu0 %vm325_vm3, %v642_v2 }
 0x61f   :  { %v693_v30 = vpop.f32.mrb[16].mxu0 }
 0x620   :  { %v694_v31 = vadd.f32 %v693_v30, %v652_v29  ;;  %v844_v32 = vpop.f32.mrb[17].mxu0 }
 0x621   :  { %v696_v33 = vpop.f32.mrb[18].mxu0 }
 0x622   :  { %v845_v34 = vpop.f32.mrb[19].mxu0  ;;  %700 = vst.msk [vmem:[#allocation3] sm:$0x1] %vm699_vm4, %v694_v31 }
 0x623   :  { %876 = shalt.err (!%p873_p4)
}
 0x624   :  { %s877_s9 = scalar_lea.hbm %s1118_s16, 16 }
 0x625   :  { %p878_p5 = scmp.ne.s32.totalorder %s1118_s16, %s877_s9  ;;  %p881_p6 = scmp.lt.u32.totalorder %s877_s9, %s1118_s16 }
 0x627   :  { %p883_p7 = pnand %p881_p6, %p878_p5 }
 0x629   :  { %886 = shalt.err (!%p883_p7)
}
 0x62a   :  { %710 = dma.vmem_to_hbm [thread:$0]  %s708_s7, 16, %s1118_s16, [#allocation4]  }
 0x62b   :  { %887 = dma.done.wait [#allocation4], 16  }
 0x62c   :  { %888 = vsyncadd [#allocation4], 4294967280 }
 0x62d   :  { %714 = vsyncpa [#allocation4], 1 }

</bundles_post_ra>
